<compile_context>
chip_gen: v7x
topology: tpu7x:2x2x1
jax: 0.10.0
libtpu: 0.0.40
codegen_flags: <defaults>
</compile_context>

<pallas_src>
import functools

import jax
import jax.numpy as jnp
import numpy as np
from jax.experimental import pallas as pl
from jax.experimental.pallas import tpu as pltpu


_NEG_BIG = -1e30  # finite "-inf" sentinel: avoids inf/nan corner cases with padded tiles


def _cdiv(a, b):
    return -(-a // b)


@functools.lru_cache(maxsize=None)
def _vmem_limit_bytes():
    """Scoped VMEM budget: 3/4 of physical capacity, capped at 96 MiB."""
    cap = 128 * 1024 * 1024
    try:
        hw = int(pltpu.get_tpu_info().vmem_capacity_bytes)
        if hw >= 32 * 1024 * 1024:
            cap = hw
    except Exception:  # conservative fallback (older jax / no device query)
        pass
    return min((cap * 3) // 4, 96 * 1024 * 1024)


def _bcast_spec(arr):
    """Full-array block mapped to block (0,...,0) for every grid step (weights)."""
    nd = arr.ndim
    return pl.BlockSpec(arr.shape, lambda *_: (0,) * nd)


# -----------------------------------------------------------------------------
# Single-pass fused kernel: one whole (C, N) slab per batch element.
# -----------------------------------------------------------------------------
def _fused_kernel(x_ref, wq_ref, wv_w_ref, wv_b_ref, wz_w_ref, wz_b_ref,
                  g_ref, beta_ref, spq_w_ref, spq_b_ref, spv_w_ref, spv_b_ref,
                  o_ref, *, res):
    x = x_ref[0]                                                       # (C, N), x dtype
    xf = x.astype(jnp.float32)
    inv_n = 1.0 / x.shape[-1]

    # --- channel branch: softmax(Wq x) folded into a weighted mean of x -----
    # (Wq bias dropped: softmax is shift-invariant; Wv bias added once to (C,1)).
    s = jnp.dot(wq_ref[...], x, preferred_element_type=jnp.float32)    # (1, N)
    m = jnp.max(s, axis=-1, keepdims=True)
    p = jnp.exp(s - m)                                                 # (1, N)
    x_soft = (jnp.sum(xf * p, axis=-1, keepdims=True)
              / jnp.sum(p, axis=-1, keepdims=True))                    # (C, 1)
    z = jnp.dot(wv_w_ref[...], x_soft,
                preferred_element_type=jnp.float32) + wv_b_ref[...]    # (ch, 1)
    wz = jnp.dot(wz_w_ref[...], z,
                 preferred_element_type=jnp.float32) + wz_b_ref[...]   # (C, 1)
    mu = jnp.mean(wz, axis=0, keepdims=True)
    var = jnp.mean((wz - mu) ** 2, axis=0, keepdims=True)
    ln = (wz - mu) * jax.lax.rsqrt(var + 1e-5) * g_ref[...] + beta_ref[...]
    ch_weight = jax.nn.sigmoid(ln)                                     # (C, 1)

    # --- spatial branch: agp(Wq_sp x) = Wq_sp mean(x); channel softmax folded
    #     into the spv weights: sp_q^T (Wv_sp x + b) == (sp_q^T Wv_sp) x + sp_q^T b.
    x_bar = jnp.sum(xf, axis=-1, keepdims=True) * inv_n                # (C, 1)
    sp_mean = (jnp.dot(spq_w_ref[...], x_bar,
                       preferred_element_type=jnp.float32) + spq_b_ref[...])  # (ch, 1)
    m2 = jnp.max(sp_mean, axis=0, keepdims=True)
    e2 = jnp.exp(sp_mean - m2)
    sp_q = e2 / jnp.sum(e2, axis=0, keepdims=True)                     # (ch, 1)
    v_fold = jnp.sum(spv_w_ref[...] * sp_q, axis=0, keepdims=True)     # (1, C)
    b_fold = jnp.sum(spv_b_ref[...] * sp_q, axis=0, keepdims=True)     # (1, 1)
    sp_weight = jax.nn.sigmoid(
        jnp.dot(v_fold.astype(x.dtype), x,
                preferred_element_type=jnp.float32) + b_fold)          # (1, N)

    scale = ch_weight + sp_weight                                      # (C, N)
    if res:
        scale = scale + 1.0                                            # fused residual
    o_ref[0] = (xf * scale).astype(o_ref.dtype)


# -----------------------------------------------------------------------------
# Tiled path, pass 1: online softmax + running sums over N tiles.
# Per tile: one 1-row score matvec; accumulators live in the (revisited) out blocks.
# -----------------------------------------------------------------------------
def _stats_kernel(x_ref, wq_ref, m_ref, l_ref, xs_ref, xsum_ref, *,
                  n_valid, tile_n, padded):
    t = pl.program_id(2)

    @pl.when(t == 0)
    def _():
        m_ref[...] = jnp.full(m_ref.shape, _NEG_BIG, jnp.float32)
        l_ref[...] = jnp.zeros(l_ref.shape, jnp.float32)
        xs_ref[...] = jnp.zeros(xs_ref.shape, jnp.float32)
        xsum_ref[...] = jnp.zeros(xsum_ref.shape, jnp.float32)

    x = x_ref[0]                                                       # (C, nt)
    xf = x.astype(jnp.float32)
    s = jnp.dot(wq_ref[...], x, preferred_element_type=jnp.float32)    # (1, nt)

    if padded:
        # zero-padded trailing columns must not contribute to the softmax sums
        start = (pl.program_id(1) * pl.num_programs(2) + t) * tile_n
        col = jax.lax.broadcasted_iota(jnp.int32, s.shape, 1) + start
        s = jnp.where(col < n_valid, s, _NEG_BIG)

    m_old = m_ref[0]                                                   # (1, 1)
    m_new = jnp.maximum(m_old, jnp.max(s, axis=-1, keepdims=True))
    alpha = jnp.exp(m_old - m_new)                                     # (1, 1)
    p = jnp.exp(s - m_new)                                             # (1, nt); 0 at padded cols
    l_ref[0] = alpha * l_ref[0] + jnp.sum(p, axis=-1, keepdims=True)
    xs_ref[0] = alpha * xs_ref[0] + jnp.sum(xf * p, axis=-1, keepdims=True)
    xsum_ref[0] = xsum_ref[0] + jnp.sum(xf, axis=-1, keepdims=True)    # padded x is zero
    m_ref[0] = m_new


# -----------------------------------------------------------------------------
# Tiled path, pass 1b: merge the per-split partials, compute the channel gate
# and fold the spatial softmax into a (1, C) row + scalar for pass 2.  Tiny.
# -----------------------------------------------------------------------------
def _finalize_kernel(m_ref, l_ref, xs_ref, xsum_ref,
                     wv_w_ref, wv_b_ref, wz_w_ref, wz_b_ref, g_ref, beta_ref,
                     spq_w_ref, spq_b_ref, spv_w_ref, spv_b_ref,
                     cw_ref, vf_ref, bf_ref, *, n_parts, inv_n):
    m = m_ref[0]                                                       # (1, 1)
    for q in range(1, n_parts):
        m = jnp.maximum(m, m_ref[q])
    a0 = jnp.exp(m_ref[0] - m)
    l = a0 * l_ref[0]
    xs = a0 * xs_ref[0]
    x_sum = xsum_ref[0]
    for q in range(1, n_parts):
        aq = jnp.exp(m_ref[q] - m)
        l = l + aq * l_ref[q]
        xs = xs + aq * xs_ref[q]
        x_sum = x_sum + xsum_ref[q]

    x_soft = xs / l                                                    # (C, 1)
    x_bar = x_sum * inv_n                                              # (C, 1)

    # channel gate
    z = jnp.dot(wv_w_ref[...], x_soft,
                preferred_element_type=jnp.float32) + wv_b_ref[...]    # (ch, 1)
    wz = jnp.dot(wz_w_ref[...], z,
                 preferred_element_type=jnp.float32) + wz_b_ref[...]   # (C, 1)
    mu = jnp.mean(wz, axis=0, keepdims=True)
    var = jnp.mean((wz - mu) ** 2, axis=0, keepdims=True)
    ln = (wz - mu) * jax.lax.rsqrt(var + 1e-5) * g_ref[...] + beta_ref[...]
    cw_ref[0] = jax.nn.sigmoid(ln)                                     # (C, 1)

    # spatial softmax folded into the pass-2 apply row
    sp_mean = (jnp.dot(spq_w_ref[...], x_bar,
                       preferred_element_type=jnp.float32) + spq_b_ref[...])  # (ch, 1)
    m2 = jnp.max(sp_mean, axis=0, keepdims=True)
    e2 = jnp.exp(sp_mean - m2)
    sp_q = e2 / jnp.sum(e2, axis=0, keepdims=True)                     # (ch, 1)
    vf_ref[0] = jnp.sum(spv_w_ref[...] * sp_q, axis=0, keepdims=True)  # (1, C)
    bf_ref[0] = jnp.sum(spv_b_ref[...] * sp_q, axis=0, keepdims=True)  # (1, 1)


# -----------------------------------------------------------------------------
# Tiled path, pass 2: fully parallel apply (1-row matvec, sigmoid, fused residual).
# -----------------------------------------------------------------------------
def _apply_kernel(x_ref, cw_ref, vf_ref, bf_ref, o_ref, *, res):
    x = x_ref[0]                                                       # (C, nt)
    sp_weight = jax.nn.sigmoid(
        jnp.dot(vf_ref[0].astype(x.dtype), x,
                preferred_element_type=jnp.float32) + bf_ref[0])       # (1, nt)
    scale = cw_ref[0] + sp_weight                                      # (C, nt)
    if res:
        scale = scale + 1.0
    o_ref[0] = (x * scale).astype(o_ref.dtype)


# -----------------------------------------------------------------------------
# Parameters (1x1x1 Conv3d weights stored as (Cout, Cin); biases as (Cout, 1)).
# -----------------------------------------------------------------------------
def init_params(key, channel):
    c, ch = channel, channel // 2
    ks = jax.random.split(key, 10)
    scale = 0.1

    def w(k, shape):
        return scale * jax.random.normal(k, shape, dtype=jnp.float32)

    return dict(
        wv_w=w(ks[0], (ch, c)),  wv_b=w(ks[1], (ch, 1)),
        wq_w=w(ks[2], (1, c)),   wq_b=w(ks[3], (1, 1)),
        wz_w=w(ks[4], (c, ch)),  wz_b=w(ks[5], (c, 1)),
        ln_g=jnp.ones((c, 1), jnp.float32), ln_b=jnp.zeros((c, 1), jnp.float32),
        spv_w=w(ks[6], (ch, c)), spv_b=w(ks[7], (ch, 1)),
        spq_w=w(ks[8], (ch, c)), spq_b=w(ks[9], (ch, 1)),
    )


@functools.partial(jax.jit, static_argnames=("res", "n_tile", "out_dtype"))
def parallel_polarized_self_attention(x, params, *, res=False, n_tile=None, out_dtype=None):
    """x: (B, C, H, W, D) float32 or bfloat16, same layout as the PyTorch module."""
    B, C, H, W, D = x.shape
    N = H * W * D
    out_dt = x.dtype if out_dtype is None else jnp.dtype(out_dtype)
    p = params
    xf = x.reshape(B, C, N)                         # channel-first; pure reshape
    wq_row = p["wq_w"].astype(x.dtype)              # (1, C); wq bias dropped (softmax shift-invariant)

    vmem_limit = _vmem_limit_bytes()
    slab_budget = vmem_limit // (4 * 12)            # single-pass: ~8 resident copies of the slab
    tile_budget = vmem_limit // (4 * 10)            # tiled: ~6 resident copies of a (C, nt) tile

    # ------------------------------ single-pass path ------------------------------
    if n_tile is None and C * N <= slab_budget:
        consts = [wq_row, p["wv_w"], p["wv_b"], p["wz_w"], p["wz_b"],
                  p["ln_g"], p["ln_b"], p["spq_w"], p["spq_b"], p["spv_w"], p["spv_b"]]
        out = pl.pallas_call(
            functools.partial(_fused_kernel, res=res),
            out_shape=jax.ShapeDtypeStruct((B, C, N), out_dt),
            grid_spec=pltpu.PrefetchScalarGridSpec(
                num_scalar_prefetch=0,
                grid=(B,),
                in_specs=[pl.BlockSpec((1, C, N), lambda b: (b, 0, 0))]
                         + [_bcast_spec(c) for c in consts],
                out_specs=pl.BlockSpec((1, C, N), lambda b: (b, 0, 0)),
            ),
            compiler_params=pltpu.CompilerParams(
                dimension_semantics=("parallel",),
                vmem_limit_bytes=vmem_limit),
        )(xf, *consts)
        return out.reshape(B, C, H, W, D)

    # ------------------------------ two-phase tiled path --------------------------
    if n_tile is None:
        n128 = _cdiv(N, 128) * 128
        T = max(2, _cdiv(C * n128, tile_budget))
        T += T % 2                                  # even -> 2-way split of pass 1
        nt = _cdiv(n128 // 128, T) * 128            # multi-MiB, lane-dense tiles
    else:
        nt = int(n_tile)
        if nt <= 0 or nt % 128 != 0:
            raise ValueError(f"n_tile={nt} must be a positive multiple of 128")
        T = max(1, _cdiv(N, nt))
    P = 2 if (T >= 2 and T % 2 == 0) else 1         # pass-1 core split (megacore at B=1)
    T2 = T // P
    n_pad = nt * T
    padded = n_pad != N
    xp = jnp.pad(xf, ((0, 0), (0, 0), (0, n_pad - N))) if padded else xf

    # Pass 1: per-(batch, split) online-softmax partials.  Only the 1-row score
    # matvec touches the MXU; everything else is running sums -> HBM/DMA bound.
    m_p, l_p, xs_p, xsum_p = pl.pallas_call(
        functools.partial(_stats_kernel, n_valid=N, tile_n=nt, padded=padded),
        out_shape=(jax.ShapeDtypeStruct((B * P, 1, 1), jnp.float32),
                   jax.ShapeDtypeStruct((B * P, 1, 1), jnp.float32),
                   jax.ShapeDtypeStruct((B * P, C, 1), jnp.float32),
                   jax.ShapeDtypeStruct((B * P, C, 1), jnp.float32)),
        grid_spec=pltpu.PrefetchScalarGridSpec(
            num_scalar_prefetch=0,
            grid=(B, P, T2),
            in_specs=[pl.BlockSpec((1, C, nt), lambda b, s, t: (b, 0, s * T2 + t)),
                      _bcast_spec(wq_row)],
            out_specs=[pl.BlockSpec((1, 1, 1), lambda b, s, t: (b * P + s, 0, 0)),
                       pl.BlockSpec((1, 1, 1), lambda b, s, t: (b * P + s, 0, 0)),
                       pl.BlockSpec((1, C, 1), lambda b, s, t: (b * P + s, 0, 0)),
                       pl.BlockSpec((1, C, 1), lambda b, s, t: (b * P + s, 0, 0))],
        ),
        compiler_params=pltpu.CompilerParams(
            dimension_semantics=("parallel", "parallel", "arbitrary"),
            vmem_limit_bytes=vmem_limit),
    )(xp, wq_row)

    # Pass 1b: tiny per-batch merge + gates (LayerNorm/sigmoid + spatial-softmax fold).
    f_consts = [p["wv_w"], p["wv_b"], p["wz_w"], p["wz_b"], p["ln_g"], p["ln_b"],
                p["spq_w"], p["spq_b"], p["spv_w"], p["spv_b"]]
    cw, vf, bf = pl.pallas_call(
        functools.partial(_finalize_kernel, n_parts=P, inv_n=1.0 / N),
        out_shape=(jax.ShapeDtypeStruct((B, C, 1), jnp.float32),
                   jax.ShapeDtypeStruct((B, 1, C), jnp.float32),
                   jax.ShapeDtypeStruct((B, 1, 1), jnp.float32)),
        grid_spec=pltpu.PrefetchScalarGridSpec(
            num_scalar_prefetch=0,
            grid=(B,),
            in_specs=[pl.BlockSpec((P, 1, 1), lambda b: (b, 0, 0)),
                      pl.BlockSpec((P, 1, 1), lambda b: (b, 0, 0)),
                      pl.BlockSpec((P, C, 1), lambda b: (b, 0, 0)),
                      pl.BlockSpec((P, C, 1), lambda b: (b, 0, 0))]
                     + [_bcast_spec(c) for c in f_consts],
            out_specs=[pl.BlockSpec((1, C, 1), lambda b: (b, 0, 0)),
                       pl.BlockSpec((1, 1, C), lambda b: (b, 0, 0)),
                       pl.BlockSpec((1, 1, 1), lambda b: (b, 0, 0))],
        ),
        compiler_params=pltpu.CompilerParams(
            dimension_semantics=("parallel",),
            vmem_limit_bytes=vmem_limit),
    )(m_p, l_p, xs_p, xsum_p, *f_consts)

    # Pass 2: fully parallel apply; residual fused into the store.
    # (pipeline_mode=pl.Buffered(3) on x could hide residual DMA bubbles; left at the
    #  default depth since both passes are already HBM-bound with multi-MiB tiles.)
    out = pl.pallas_call(
        functools.partial(_apply_kernel, res=res),
        out_shape=jax.ShapeDtypeStruct((B, C, n_pad), out_dt),
        grid_spec=pltpu.PrefetchScalarGridSpec(
            num_scalar_prefetch=0,
            grid=(B, T),
            in_specs=[pl.BlockSpec((1, C, nt), lambda b, t: (b, 0, t)),
                      pl.BlockSpec((1, C, 1), lambda b, t: (b, 0, 0)),
                      pl.BlockSpec((1, 1, C), lambda b, t: (b, 0, 0)),
                      pl.BlockSpec((1, 1, 1), lambda b, t: (b, 0, 0))],
            out_specs=pl.BlockSpec((1, C, nt), lambda b, t: (b, 0, t)),
        ),
        compiler_params=pltpu.CompilerParams(
            dimension_semantics=("parallel", "parallel"),
            vmem_limit_bytes=vmem_limit),
    )(xp, cw, vf, bf)
    if padded:
        out = out[:, :, :N]
    return out.reshape(B, C, H, W, D)


# -----------------------------------------------------------------------------
# Pure-JAX reference mirroring the PyTorch forward, for verification.
# -----------------------------------------------------------------------------
def _reference_forward(x, p, res=False):
    B, C, H, W, D = x.shape
    N = H * W * D
    xf = x.reshape(B, C, N)
    hi = jax.lax.Precision.HIGHEST

    def conv(w, b, inp):
        return jnp.einsum("oi,bin->bon", w, inp, precision=hi) + b[None]

    ch_wv = conv(p["wv_w"], p["wv_b"], xf)                                    # (B, C/2, N)
    ch_wq = conv(p["wq_w"], p["wq_b"], xf)                                    # (B, 1, N)
    q = jax.nn.softmax(ch_wq, axis=-1)
    z = jnp.einsum("bcn,bxn->bcx", ch_wv, q, precision=hi)                    # (B, C/2, 1)
    wz = jnp.einsum("oi,bix->box", p["wz_w"], z, precision=hi) + p["wz_b"][None]
    mu = jnp.mean(wz, axis=1, keepdims=True)
    var = jnp.mean((wz - mu) ** 2, axis=1, keepdims=True)
    ln = (wz - mu) / jnp.sqrt(var + 1e-5) * p["ln_g"][None] + p["ln_b"][None]
    channel_out = jax.nn.sigmoid(ln) * xf

    sp_wv = conv(p["spv_w"], p["spv_b"], xf)                                  # (B, C/2, N)
    sp_wq = conv(p["spq_w"], p["spq_b"], xf)                                  # (B, C/2, N)
    sp_q = jax.nn.softmax(jnp.mean(sp_wq, axis=-1, keepdims=True), axis=1)    # (B, C/2, 1)
    sp_wz = jnp.einsum("bcx,bcn->bxn", sp_q, sp_wv, precision=hi)             # (B, 1, N)
    spatial_out = jax.nn.sigmoid(sp_wz) * xf

    out = spatial_out + channel_out
    if res:
        out = out + xf
    return out.reshape(B, C, H, W, D)


if __name__ == "__main__":
    key = jax.random.PRNGKey(0)
    k = jax.random.split(key, 8)

    # Config A: small volume -> single-pass fused kernel path (+ res + bf16 I/O).
    B, C, H, W, D = 2, 16, 4, 4, 4
    x = jax.random.normal(k[0], (B, C, H, W, D), dtype=jnp.float32)
    params = init_params(k[1], C)
    ref = _reference_forward(x, params, res=False)

    out = jax.block_until_ready(parallel_polarized_self_attention(x, params, res=False))
    assert out.shape == x.shape and out.dtype == x.dtype
    np.testing.assert_allclose(np.asarray(out), np.asarray(ref), rtol=3e-4, atol=1e-4)

    out_res = jax.block_until_ready(parallel_polarized_self_attention(x, params, res=True))
    np.testing.assert_allclose(np.asarray(out_res),
                               np.asarray(_reference_forward(x, params, res=True)),
                               rtol=3e-4, atol=1e-4)

    out_bf16 = jax.block_until_ready(
        parallel_polarized_self_attention(x.astype(jnp.bfloat16), params, res=False))
    assert out_bf16.dtype == jnp.bfloat16
    np.testing.assert_allclose(np.asarray(out_bf16.astype(jnp.float32)), np.asarray(ref),
                               rtol=5e-2, atol=5e-2)

    # Config B: forced tiled path (multi-tile online softmax, 2-way pass-1 split).
    B2, C2, H2, W2, D2 = 2, 32, 8, 8, 8
    x2 = jax.random.normal(k[2], (B2, C2, H2, W2, D2), dtype=jnp.float32)
    params2 = init_params(k[3], C2)
    out2 = jax.block_until_ready(
        parallel_polarized_self_attention(x2, params2, res=False, n_tile=128))
    np.testing.assert_allclose(np.asarray(out2),
                               np.asarray(_reference_forward(x2, params2, res=False)),
                               rtol=3e-4, atol=1e-4)

    # Config C: ragged N (not a multiple of 128) -> padded + masked tiled path, res fused.
    B3, C3, H3, W3, D3 = 2, 32, 9, 5, 5
    x3 = jax.random.normal(k[4], (B3, C3, H3, W3, D3), dtype=jnp.float32)
    params3 = init_params(k[5], C3)
    out3 = jax.block_until_ready(
        parallel_polarized_self_attention(x3, params3, res=True, n_tile=128))
    np.testing.assert_allclose(np.asarray(out3),
                               np.asarray(_reference_forward(x3, params3, res=True)),
                               rtol=3e-4, atol=1e-4)

    # Config D: large volume -> automatic tile selection (tiled path on all chips).
    B4, C4, H4, W4, D4 = 1, 256, 32, 32, 16
    x4 = jax.random.normal(k[6], (B4, C4, H4, W4, D4), dtype=jnp.float32)
    params4 = init_params(k[7], C4)
    out4 = jax.block_until_ready(parallel_polarized_self_attention(x4, params4, res=False))
    np.testing.assert_allclose(np.asarray(out4),
                               np.asarray(_reference_forward(x4, params4, res=False)),
                               rtol=3e-4, atol=1e-4)

    print("KERNEL_OK")
</pallas_src>

<mosaic_0001>
module attributes {stable_mosaic.version = 11 : i64} {
  func.func @_fused_kernel(%arg0: i32, %arg1: memref<1x16x64xf32, #tpu.memory_space<vmem>>, %arg2: memref<1x16xf32, #tpu.memory_space<vmem>>, %arg3: memref<8x16xf32, #tpu.memory_space<vmem>>, %arg4: memref<8x1xf32, #tpu.memory_space<vmem>>, %arg5: memref<16x8xf32, #tpu.memory_space<vmem>>, %arg6: memref<16x1xf32, #tpu.memory_space<vmem>>, %arg7: memref<16x1xf32, #tpu.memory_space<vmem>>, %arg8: memref<16x1xf32, #tpu.memory_space<vmem>>, %arg9: memref<8x16xf32, #tpu.memory_space<vmem>>, %arg10: memref<8x1xf32, #tpu.memory_space<vmem>>, %arg11: memref<8x16xf32, #tpu.memory_space<vmem>>, %arg12: memref<8x1xf32, #tpu.memory_space<vmem>>, %arg13: memref<1x16x64xf32, #tpu.memory_space<vmem>>) attributes {dimension_semantics = [#tpu.dimension_semantics<parallel>], iteration_bounds = array<i64: 2>, scalar_prefetch = 0 : i64, scratch_operands = 0 : i64, tpu.core_type = #tpu.core_type<tc>, window_params = [{transform_indices = @transform_0, window_bounds = array<i64: 1, 16, 64>}, {pipeline_mode = #tpu.pipeline_mode<synchronous>, transform_indices = @transform_1, window_bounds = array<i64: 1, 16>}, {pipeline_mode = #tpu.pipeline_mode<synchronous>, transform_indices = @transform_2, window_bounds = array<i64: 8, 16>}, {pipeline_mode = #tpu.pipeline_mode<synchronous>, transform_indices = @transform_3, window_bounds = array<i64: 8, 1>}, {pipeline_mode = #tpu.pipeline_mode<synchronous>, transform_indices = @transform_4, window_bounds = array<i64: 16, 8>}, {pipeline_mode = #tpu.pipeline_mode<synchronous>, transform_indices = @transform_5, window_bounds = array<i64: 16, 1>}, {pipeline_mode = #tpu.pipeline_mode<synchronous>, transform_indices = @transform_6, window_bounds = array<i64: 16, 1>}, {pipeline_mode = #tpu.pipeline_mode<synchronous>, transform_indices = @transform_7, window_bounds = array<i64: 16, 1>}, {pipeline_mode = #tpu.pipeline_mode<synchronous>, transform_indices = @transform_8, window_bounds = array<i64: 8, 16>}, {pipeline_mode = #tpu.pipeline_mode<synchronous>, transform_indices = @transform_9, window_bounds = array<i64: 8, 1>}, {pipeline_mode = #tpu.pipeline_mode<synchronous>, transform_indices = @transform_10, window_bounds = array<i64: 8, 16>}, {pipeline_mode = #tpu.pipeline_mode<synchronous>, transform_indices = @transform_11, window_bounds = array<i64: 8, 1>}, {transform_indices = @transform_12, window_bounds = array<i64: 1, 16, 64>}]} {
    %c0 = arith.constant 0 : index
    %c0_0 = arith.constant 0 : index
    %c0_1 = arith.constant 0 : index
    %0 = vector.load %arg1[%c0, %c0_0, %c0_1] : memref<1x16x64xf32, #tpu.memory_space<vmem>>, vector<1x16x64xf32>
    %1 = vector.shape_cast %0 : vector<1x16x64xf32> to vector<16x64xf32>
    %c0_2 = arith.constant 0 : index
    %c0_3 = arith.constant 0 : index
    %2 = vector.load %arg2[%c0_2, %c0_3] : memref<1x16xf32, #tpu.memory_space<vmem>>, vector<1x16xf32>
    %cst = arith.constant dense<0.000000e+00> : vector<1x64xf32>
    %3 = tpu.matmul %2, %1, %cst {dimension_numbers = #tpu.dot_dimension_numbers<[1], [0], [0], [1], [0, 0, 1, 1], [], []>} : vector<1x16xf32>, vector<16x64xf32>, vector<1x64xf32> -> vector<1x64xf32>
    %cst_4 = arith.constant dense<0xFF800000> : vector<1xf32>
    %4 = vector.multi_reduction <maximumf>, %3, %cst_4 [1] : vector<1x64xf32> to vector<1xf32>
    %5 = vector.shape_cast %4 : vector<1xf32> to vector<1x1xf32>
    %6 = vector.broadcast %5 : vector<1x1xf32> to vector<1x64xf32>
    %7 = arith.subf %3, %6 : vector<1x64xf32>
    %8 = math.exp %7 : vector<1x64xf32>
    %9 = vector.broadcast %8 : vector<1x64xf32> to vector<16x64xf32>
    %10 = arith.mulf %1, %9 : vector<16x64xf32>
    %cst_5 = arith.constant dense<0.000000e+00> : vector<16xf32>
    %11 = vector.multi_reduction <add>, %10, %cst_5 [1] : vector<16x64xf32> to vector<16xf32>
    %12 = vector.shape_cast %11 : vector<16xf32> to vector<16x1xf32>
    %cst_6 = arith.constant dense<0.000000e+00> : vector<1xf32>
    %13 = vector.multi_reduction <add>, %8, %cst_6 [1] : vector<1x64xf32> to vector<1xf32>
    %14 = vector.shape_cast %13 : vector<1xf32> to vector<1x1xf32>
    %15 = vector.broadcast %14 : vector<1x1xf32> to vector<16x1xf32>
    %16 = arith.divf %12, %15 : vector<16x1xf32>
    %c0_7 = arith.constant 0 : index
    %c0_8 = arith.constant 0 : index
    %17 = vector.load %arg3[%c0_7, %c0_8] : memref<8x16xf32, #tpu.memory_space<vmem>>, vector<8x16xf32>
    %cst_9 = arith.constant dense<0.000000e+00> : vector<8x1xf32>
    %18 = tpu.matmul %17, %16, %cst_9 {dimension_numbers = #tpu.dot_dimension_numbers<[1], [0], [0], [1], [0, 0, 1, 1], [], []>} : vector<8x16xf32>, vector<16x1xf32>, vector<8x1xf32> -> vector<8x1xf32>
    %c0_10 = arith.constant 0 : index
    %c0_11 = arith.constant 0 : index
    %19 = vector.load %arg4[%c0_10, %c0_11] : memref<8x1xf32, #tpu.memory_space<vmem>>, vector<8x1xf32>
    %20 = arith.addf %18, %19 : vector<8x1xf32>
    %c0_12 = arith.constant 0 : index
    %c0_13 = arith.constant 0 : index
    %21 = vector.load %arg5[%c0_12, %c0_13] : memref<16x8xf32, #tpu.memory_space<vmem>>, vector<16x8xf32>
    %cst_14 = arith.constant dense<0.000000e+00> : vector<16x1xf32>
    %22 = tpu.matmul %21, %20, %cst_14 {dimension_numbers = #tpu.dot_dimension_numbers<[1], [0], [0], [1], [0, 0, 1, 1], [], []>} : vector<16x8xf32>, vector<8x1xf32>, vector<16x1xf32> -> vector<16x1xf32>
    %c0_15 = arith.constant 0 : index
    %c0_16 = arith.constant 0 : index
    %23 = vector.load %arg6[%c0_15, %c0_16] : memref<16x1xf32, #tpu.memory_space<vmem>>, vector<16x1xf32>
    %24 = arith.addf %22, %23 : vector<16x1xf32>
    %cst_17 = arith.constant dense<0.000000e+00> : vector<1xf32>
    %25 = vector.multi_reduction <add>, %24, %cst_17 [0] : vector<16x1xf32> to vector<1xf32>
    %26 = vector.shape_cast %25 : vector<1xf32> to vector<1x1xf32>
    %cst_18 = arith.constant 1.600000e+01 : f32
    %27 = vector.broadcast %cst_18 : f32 to vector<1x1xf32>
    %28 = arith.divf %26, %27 : vector<1x1xf32>
    %29 = vector.broadcast %28 : vector<1x1xf32> to vector<16x1xf32>
    %30 = arith.subf %24, %29 : vector<16x1xf32>
    %31 = arith.mulf %30, %30 : vector<16x1xf32>
    %cst_19 = arith.constant dense<0.000000e+00> : vector<1xf32>
    %32 = vector.multi_reduction <add>, %31, %cst_19 [0] : vector<16x1xf32> to vector<1xf32>
    %33 = vector.shape_cast %32 : vector<1xf32> to vector<1x1xf32>
    %cst_20 = arith.constant 1.600000e+01 : f32
    %34 = vector.broadcast %cst_20 : f32 to vector<1x1xf32>
    %35 = arith.divf %33, %34 : vector<1x1xf32>
    %36 = vector.broadcast %28 : vector<1x1xf32> to vector<16x1xf32>
    %37 = arith.subf %24, %36 : vector<16x1xf32>
    %cst_21 = arith.constant 9.99999974E-6 : f32
    %38 = vector.broadcast %cst_21 : f32 to vector<1x1xf32>
    %39 = arith.addf %35, %38 : vector<1x1xf32>
    %40 = math.rsqrt %39 : vector<1x1xf32>
    %41 = vector.broadcast %40 : vector<1x1xf32> to vector<16x1xf32>
    %42 = arith.mulf %37, %41 : vector<16x1xf32>
    %c0_22 = arith.constant 0 : index
    %c0_23 = arith.constant 0 : index
    %43 = vector.load %arg7[%c0_22, %c0_23] : memref<16x1xf32, #tpu.memory_space<vmem>>, vector<16x1xf32>
    %44 = arith.mulf %42, %43 : vector<16x1xf32>
    %c0_24 = arith.constant 0 : index
    %c0_25 = arith.constant 0 : index
    %45 = vector.load %arg8[%c0_24, %c0_25] : memref<16x1xf32, #tpu.memory_space<vmem>>, vector<16x1xf32>
    %46 = arith.addf %44, %45 : vector<16x1xf32>
    %47 = arith.negf %46 : vector<16x1xf32>
    %48 = math.exp %47 : vector<16x1xf32>
    %cst_26 = arith.constant 1.000000e+00 : f32
    %49 = vector.broadcast %cst_26 : f32 to vector<16x1xf32>
    %50 = arith.addf %49, %48 : vector<16x1xf32>
    %51 = arith.divf %49, %50 : vector<16x1xf32>
    %cst_27 = arith.constant dense<0.000000e+00> : vector<16xf32>
    %52 = vector.multi_reduction <add>, %1, %cst_27 [1] : vector<16x64xf32> to vector<16xf32>
    %53 = vector.shape_cast %52 : vector<16xf32> to vector<16x1xf32>
    %cst_28 = arith.constant 1.562500e-02 : f32
    %54 = vector.broadcast %cst_28 : f32 to vector<16x1xf32>
    %55 = arith.mulf %53, %54 : vector<16x1xf32>
    %c0_29 = arith.constant 0 : index
    %c0_30 = arith.constant 0 : index
    %56 = vector.load %arg9[%c0_29, %c0_30] : memref<8x16xf32, #tpu.memory_space<vmem>>, vector<8x16xf32>
    %cst_31 = arith.constant dense<0.000000e+00> : vector<8x1xf32>
    %57 = tpu.matmul %56, %55, %cst_31 {dimension_numbers = #tpu.dot_dimension_numbers<[1], [0], [0], [1], [0, 0, 1, 1], [], []>} : vector<8x16xf32>, vector<16x1xf32>, vector<8x1xf32> -> vector<8x1xf32>
    %c0_32 = arith.constant 0 : index
    %c0_33 = arith.constant 0 : index
    %58 = vector.load %arg10[%c0_32, %c0_33] : memref<8x1xf32, #tpu.memory_space<vmem>>, vector<8x1xf32>
    %59 = arith.addf %57, %58 : vector<8x1xf32>
    %cst_34 = arith.constant dense<0xFF800000> : vector<1xf32>
    %60 = vector.multi_reduction <maximumf>, %59, %cst_34 [0] : vector<8x1xf32> to vector<1xf32>
    %61 = vector.shape_cast %60 : vector<1xf32> to vector<1x1xf32>
    %62 = vector.broadcast %61 : vector<1x1xf32> to vector<8x1xf32>
    %63 = arith.subf %59, %62 : vector<8x1xf32>
    %64 = math.exp %63 : vector<8x1xf32>
    %cst_35 = arith.constant dense<0.000000e+00> : vector<1xf32>
    %65 = vector.multi_reduction <add>, %64, %cst_35 [0] : vector<8x1xf32> to vector<1xf32>
    %66 = vector.shape_cast %65 : vector<1xf32> to vector<1x1xf32>
    %67 = vector.broadcast %66 : vector<1x1xf32> to vector<8x1xf32>
    %68 = arith.divf %64, %67 : vector<8x1xf32>
    %c0_36 = arith.constant 0 : index
    %c0_37 = arith.constant 0 : index
    %69 = vector.load %arg11[%c0_36, %c0_37] : memref<8x16xf32, #tpu.memory_space<vmem>>, vector<8x16xf32>
    %70 = vector.broadcast %68 : vector<8x1xf32> to vector<8x16xf32>
    %71 = arith.mulf %69, %70 : vector<8x16xf32>
    %cst_38 = arith.constant dense<0.000000e+00> : vector<16xf32>
    %72 = vector.multi_reduction <add>, %71, %cst_38 [0] : vector<8x16xf32> to vector<16xf32>
    %73 = vector.shape_cast %72 : vector<16xf32> to vector<1x16xf32>
    %c0_39 = arith.constant 0 : index
    %c0_40 = arith.constant 0 : index
    %74 = vector.load %arg12[%c0_39, %c0_40] : memref<8x1xf32, #tpu.memory_space<vmem>>, vector<8x1xf32>
    %75 = arith.mulf %74, %68 : vector<8x1xf32>
    %cst_41 = arith.constant dense<0.000000e+00> : vector<1xf32>
    %76 = vector.multi_reduction <add>, %75, %cst_41 [0] : vector<8x1xf32> to vector<1xf32>
    %77 = vector.shape_cast %76 : vector<1xf32> to vector<1x1xf32>
    %cst_42 = arith.constant dense<0.000000e+00> : vector<1x64xf32>
    %78 = tpu.matmul %73, %1, %cst_42 {dimension_numbers = #tpu.dot_dimension_numbers<[1], [0], [0], [1], [0, 0, 1, 1], [], []>} : vector<1x16xf32>, vector<16x64xf32>, vector<1x64xf32> -> vector<1x64xf32>
    %79 = vector.broadcast %77 : vector<1x1xf32> to vector<1x64xf32>
    %80 = arith.addf %78, %79 : vector<1x64xf32>
    %81 = arith.negf %80 : vector<1x64xf32>
    %82 = math.exp %81 : vector<1x64xf32>
    %cst_43 = arith.constant 1.000000e+00 : f32
    %83 = vector.broadcast %cst_43 : f32 to vector<1x64xf32>
    %84 = arith.addf %83, %82 : vector<1x64xf32>
    %85 = arith.divf %83, %84 : vector<1x64xf32>
    %86 = vector.broadcast %51 : vector<16x1xf32> to vector<16x64xf32>
    %87 = vector.broadcast %85 : vector<1x64xf32> to vector<16x64xf32>
    %88 = arith.addf %86, %87 : vector<16x64xf32>
    %89 = arith.mulf %1, %88 : vector<16x64xf32>
    %c0_44 = arith.constant 0 : index
    %c0_45 = arith.constant 0 : index
    %c0_46 = arith.constant 0 : index
    %90 = vector.load %arg13[%c0_44, %c0_45, %c0_46] : memref<1x16x64xf32, #tpu.memory_space<vmem>>, vector<1x16x64xf32>
    %91 = vector.shape_cast %90 : vector<1x16x64xf32> to vector<16x64xf32>
    %92 = vector.shape_cast %89 : vector<16x64xf32> to vector<1x16x64xf32>
    tpu.vector_store %arg13[%c0_44, %c0_45, %c0_46], %92 {strides = array<i32>} : memref<1x16x64xf32, #tpu.memory_space<vmem>>, vector<1x16x64xf32>,
    return
  }
  func.func @transform_0(%arg0: i32) -> (i32, i32, i32) {
    %c0_i32 = arith.constant 0 : i32
    %c0_i32_0 = arith.constant 0 : i32
    %c0_i32_1 = arith.constant 0 : i32
    return %arg0, %c0_i32, %c0_i32_0 : i32, i32, i32
  }
  func.func @transform_1(%arg0: i32) -> (i32, i32) {
    %c0_i32 = arith.constant 0 : i32
    %c0_i32_0 = arith.constant 0 : i32
    %c0_i32_1 = arith.constant 0 : i32
    return %c0_i32, %c0_i32_0 : i32, i32
  }
  func.func @transform_2(%arg0: i32) -> (i32, i32) {
    %c0_i32 = arith.constant 0 : i32
    %c0_i32_0 = arith.constant 0 : i32
    %c0_i32_1 = arith.constant 0 : i32
    return %c0_i32, %c0_i32_0 : i32, i32
  }
  func.func @transform_3(%arg0: i32) -> (i32, i32) {
    %c0_i32 = arith.constant 0 : i32
    %c0_i32_0 = arith.constant 0 : i32
    %c0_i32_1 = arith.constant 0 : i32
    return %c0_i32, %c0_i32_0 : i32, i32
  }
  func.func @transform_4(%arg0: i32) -> (i32, i32) {
    %c0_i32 = arith.constant 0 : i32
    %c0_i32_0 = arith.constant 0 : i32
    %c0_i32_1 = arith.constant 0 : i32
    return %c0_i32, %c0_i32_0 : i32, i32
  }
  func.func @transform_5(%arg0: i32) -> (i32, i32) {
    %c0_i32 = arith.constant 0 : i32
    %c0_i32_0 = arith.constant 0 : i32
    %c0_i32_1 = arith.constant 0 : i32
    return %c0_i32, %c0_i32_0 : i32, i32
  }
  func.func @transform_6(%arg0: i32) -> (i32, i32) {
    %c0_i32 = arith.constant 0 : i32
    %c0_i32_0 = arith.constant 0 : i32
    %c0_i32_1 = arith.constant 0 : i32
    return %c0_i32, %c0_i32_0 : i32, i32
  }
  func.func @transform_7(%arg0: i32) -> (i32, i32) {
    %c0_i32 = arith.constant 0 : i32
    %c0_i32_0 = arith.constant 0 : i32
    %c0_i32_1 = arith.constant 0 : i32
    return %c0_i32, %c0_i32_0 : i32, i32
  }
  func.func @transform_8(%arg0: i32) -> (i32, i32) {
    %c0_i32 = arith.constant 0 : i32
    %c0_i32_0 = arith.constant 0 : i32
    %c0_i32_1 = arith.constant 0 : i32
    return %c0_i32, %c0_i32_0 : i32, i32
  }
  func.func @transform_9(%arg0: i32) -> (i32, i32) {
    %c0_i32 = arith.constant 0 : i32
    %c0_i32_0 = arith.constant 0 : i32
    %c0_i32_1 = arith.constant 0 : i32
    return %c0_i32, %c0_i32_0 : i32, i32
  }
  func.func @transform_10(%arg0: i32) -> (i32, i32) {
    %c0_i32 = arith.constant 0 : i32
    %c0_i32_0 = arith.constant 0 : i32
    %c0_i32_1 = arith.constant 0 : i32
    return %c0_i32, %c0_i32_0 : i32, i32
  }
  func.func @transform_11(%arg0: i32) -> (i32, i32) {
    %c0_i32 = arith.constant 0 : i32
    %c0_i32_0 = arith.constant 0 : i32
    %c0_i32_1 = arith.constant 0 : i32
    return %c0_i32, %c0_i32_0 : i32, i32
  }
  func.func @transform_12(%arg0: i32) -> (i32, i32, i32) {
    %c0_i32 = arith.constant 0 : i32
    %c0_i32_0 = arith.constant 0 : i32
    %c0_i32_1 = arith.constant 0 : i32
    return %arg0, %c0_i32, %c0_i32_0 : i32, i32, i32
  }
}

</mosaic_0001>

<bundles_post_ra>
// kernel: parallel_polarized_self_attention.1
= control target key start
LH: loop header
LB: loop body
LE: loop exit
PB: predicated region body
PF: predicated region fallthrough
CT: control target
= control target key end

     0   :  { %s2623_s0 = inlined_call_operand.hbm [shape: f32[2,16,64], index: 0, kind: input, shape index: {}]   ;;  %s2624_s1 = inlined_call_operand.hbm [shape: f32[1,16], index: 1, kind: input, shape index: {}]   ;;  %s2625_s2 = inlined_call_operand.hbm [shape: f32[8,16], index: 2, kind: input, shape index: {}]   ;;  %s2626_s3 = inlined_call_operand.hbm [shape: f32[8,1], index: 3, kind: input, shape index: {}]   ;;  %s2627_s4 = inlined_call_operand.hbm [shape: f32[16,8], index: 4, kind: input, shape index: {}]   ;;  %s2628_s5 = inlined_call_operand.hbm [shape: f32[16,1], index: 5, kind: input, shape index: {}]   ;;  %s2629_s6 = inlined_call_operand.hbm [shape: f32[16,1], index: 6, kind: input, shape index: {}]   ;;  %s2630_s7 = inlined_call_operand.hbm [shape: f32[16,1], index: 7, kind: input, shape index: {}]   ;;  %s2631_s8 = inlined_call_operand.hbm [shape: f32[8,16], index: 8, kind: input, shape index: {}]   ;;  %s2632_s9 = inlined_call_operand.hbm [shape: f32[8,1], index: 9, kind: input, shape index: {}]   ;;  %s2633_s10 = inlined_call_operand.hbm [shape: f32[8,16], index: 10, kind: input, shape index: {}]   ;;  %s2634_s11 = inlined_call_operand.hbm [shape: f32[8,1], index: 11, kind: input, shape index: {}]   ;;  %s2635_s12 = inlined_call_operand.hbm [shape: f32[2,16,64], index: 12, kind: output, shape index: {}]  }
   0x1   :  { %2646 = sst [smem:[#allocation33_spill]] %s2623_s0 }
   0x2   :  { %2647 = sst [smem:[#allocation34_spill]] %s2624_s1 }
   0x3   :  { %2648 = sst [smem:[#allocation35_spill]] %s2626_s3 }
   0x4   :  { %2649 = sst [smem:[#allocation36_spill]] %s2635_s12 }
   0x5   :  { %17 = vsyncpa [#allocation3], 0 }
   0x6   :  { %19 = vsyncpa [#allocation3 + $0x1], 0 }
   0x7   :  { %20 = vsyncpa [#allocation6], 0 }
   0x8   :  { %21 = vsyncpa [#allocation9], 0 }
   0x9   :  { %22 = vsyncpa [#allocation12], 0 }
   0xa   :  { %23 = vsyncpa [#allocation15], 0 }
   0xb   :  { %24 = vsyncpa [#allocation18], 0 }
   0xc   :  { %25 = vsyncpa [#allocation21], 0 }
   0xd   :  { %26 = vsyncpa [#allocation4], 0 }
   0xe   :  { %28 = vsyncpa [#allocation4 + $0x1], 0  ;;  %s2129_s21 = smov 0   ;;  %s2131_s22 = smov 0  }
   0xf   :  { %s2133_s23 = smov 0   ;;  %s2135_s24 = smov 0  }
  0x10 LB: > { %s2043_s25 = smov [#allocation5]   ;;  %s2150_s27 = sadd.s32 4294967295, %s2041_s24   ;;  %s2041_s24 = sphi %s2135_s24, %s2687_s24   ;;  %s2037_s23 = sphi %s2133_s23, %s2686_s23   ;;  %s2033_s22 = sphi %s2131_s22, %s2685_s22   ;;  %s2029_s21 = sphi %s2129_s21, %s2684_s21  }
  0x11   : > { %s335_s26 = sshll.u32 %s2043_s25, 4  ;;  %2650 = sst [smem:[#allocation31_spill]] %s2150_s27  ;;  %s2155_s26 = int_to_ptr.vmem [resolvable:$true] %s335_s26 }
  0x12   : > { %p1318_p0 = scmp.ge.s32.totalorder %s2041_s24, 1  ;;  %p2642_p1 = scmp.eq.s32.totalorder %s2150_s27, 0 }
  0x13   : > { %p322_p2 = scmp.lt.s32.totalorder %s2041_s24, 3  ;;  %s2044_s29 = smov [#allocation8]  }
  0x14   : > { %s357_s30 = sshll.u32 %s2044_s29, 4  ;;  %s2045_s14 = smov [#allocation11]   ;;  %s2164_s30 = int_to_ptr.vmem [resolvable:$true] %s357_s30 }
  0x15   : > { %p2157_p3 = pnand %p1318_p0, %p322_p2  ;;  %s380_s15 = sshll.u32 %s2045_s14, 4  ;;  %s2172_s15 = int_to_ptr.vmem [resolvable:$true] %s380_s15 }
  0x16   : > { %s2654_s1 = sld [smem:[#allocation34_spill]] }
  0x17   : > { %s2651_s28 = scalar_select %p2157_p3, 1, 0 }
  0x18   : > { %p1472_p5 = pneg %p2157_p3 }
  0x19   : > { %2652 = sst [smem:[#allocation32_spill]] %s2651_s28 }
  0x1a   : > { %p2168_p6 = pnand %p1472_p5, %p2642_p1 }
  0x1c   : > { %s1613_s18 = scalar_lea.hbm %s2654_s1, 16  ;;  %p2182_p8 = pneg %p2168_p6 }
  0x1d   : > { %p1614_p7 = scmp.ne.s32.totalorder %s2654_s1, %s1613_s18  ;;  %p1620_p11 = scmp.lt.u32.totalorder %s1613_s18, %s2654_s1 }
  0x1f   : > { %p1616_p9 = pnand %p2182_p8, %p1614_p7 }
  0x21   : > { %p1617_p10 = pneg %p1616_p9 }
  0x23   : > { %p1622_p12 = pnand %p1620_p11, %p1617_p10 }
  0x25   : > { %1625 = shalt.err (!%p1622_p12)
}
  0x26   : > { %s1626_s16 = scalar_lea.vmem %s2155_s26, 16  ;;  %s1633_s17 = scalar_lea.vmem %s2155_s26, 32 }
  0x27   : > { %p1627_p13 = scmp.ne.s32.totalorder %s2155_s26, %s1626_s16  ;;  %p1634_p5 = scmp.lt.s32.totalorder %s2155_s26, %s2155_s26 }
  0x28   : > { %p1635_p7 = scmp.lt.s32.totalorder %s1633_s17, %s1626_s16 }
  0x29   : > { %p1629_p0 = pnand %p1627_p13, %p2182_p8 }
  0x2a   : > { %p1636_p9 = por %p1635_p7, %p1634_p5 }
  0x2b   : > { %p1630_p2 = pneg %p1629_p0 }
  0x2d   : > { %p1637_p4 = pnand %p1636_p9, %p1630_p2 }
  0x2f   : > { %1640 = shalt.err (!%p1637_p4)
}
  0x30   : > { %1475 = dma.hbm_to_vmem [thread:$0]  (!%p2168_p6), %s2654_s1, 16, %s2155_s26, [#allocation6]  }
  0x31   : > { %s2656_s3 = sld [smem:[#allocation35_spill]] }
  0x37   : > { %s1641_s14 = scalar_lea.hbm %s2656_s3, 128 }
  0x38   : > { %p1642_p10 = scmp.ne.s32.totalorder %s2656_s3, %s1641_s14  ;;  %p1648_p4 = scmp.lt.u32.totalorder %s1641_s14, %s2656_s3 }
  0x3a   : > { %p1644_p11 = pnand %p1642_p10, %p2182_p8 }
  0x3c   : > { %p1645_p12 = pneg %p1644_p11 }
  0x3e   : > { %p1650_p13 = pnand %p1648_p4, %p1645_p12 }
  0x40   : > { %1653 = shalt.err (!%p1650_p13)
}
  0x41   : > { %s1654_s26 = scalar_lea.vmem %s2164_s30, 128  ;;  %p1662_p7 = scmp.lt.s32.totalorder %s2164_s30, %s2164_s30 }
  0x42   : > { %p1655_p0 = scmp.ne.s32.totalorder %s2164_s30, %s1654_s26  ;;  %p1663_p9 = scmp.lt.s32.totalorder %s1654_s26, %s1654_s26 }
  0x44   : > { %p1657_p2 = pnand %p1655_p0, %p2182_p8  ;;  %p1664_p10 = por %p1663_p9, %p1662_p7 }
  0x46   : > { %p1658_p5 = pneg %p1657_p2 }
  0x48   : > { %p1665_p11 = pnand %p1664_p10, %p1658_p5 }
  0x4a   : > { %1668 = shalt.err (!%p1665_p11)
}
  0x4b   : > { %1481 = dma.hbm_to_vmem [thread:$0]  (!%p2168_p6), %s2656_s3, 128, %s2164_s30, [#allocation9]  }
  0x4c   : > { %s1669_s20 = scalar_lea.hbm %s2628_s5, 256 }
  0x4d   : > { %p1670_p12 = scmp.ne.s32.totalorder %s2628_s5, %s1669_s20  ;;  %p1676_p0 = scmp.lt.u32.totalorder %s1669_s20, %s2628_s5 }
  0x4f   : > { %p1672_p4 = pnand %p1670_p12, %p2182_p8 }
  0x51   : > { %p1673_p13 = pneg %p1672_p4 }
  0x53   : > { %p1678_p2 = pnand %p1676_p0, %p1673_p13 }
  0x55   : > { %1681 = shalt.err (!%p1678_p2)
}
  0x56   : > { %s1682_s30 = scalar_lea.vmem %s2172_s15, 256  ;;  %p1690_p10 = scmp.lt.s32.totalorder %s2172_s15, %s2172_s15 }
  0x57   : > { %p1683_p5 = scmp.ne.s32.totalorder %s2172_s15, %s1682_s30  ;;  %p1691_p11 = scmp.lt.s32.totalorder %s1682_s30, %s1682_s30 }
  0x59   : > { %p1685_p7 = pnand %p1683_p5, %p2182_p8  ;;  %p1692_p12 = por %p1691_p11, %p1690_p10 }
  0x5b   : > { %p1686_p9 = pneg %p1685_p7 }
  0x5d   : > { %p1693_p4 = pnand %p1692_p12, %p1686_p9 }
  0x5f   : > { %1696 = shalt.err (!%p1693_p4)
}
  0x60   : > { %s2644_s26 = smov 128   ;;  %s2047_s12 = smov 8  }
  0x61   : > { %1487 = dma.hbm_to_vmem [thread:$0]  (!%p2168_p6), %s2628_s5, 256, %s2172_s15, [#allocation12], %s2644_s26, %s2644_s26, %s2047_s12  }
  0x62   : > { %s2048_s19 = smov [#allocation14]   ;;  %s2049_s29 = smov [#allocation17]  }
  0x63   : > { %s406_s20 = sshll.u32 %s2048_s19, 4  ;;  %s431_s14 = sshll.u32 %s2049_s29, 4  ;;  %s407_s20 = int_to_ptr.vmem [resolvable:$true] %s406_s20  ;;  %s432_s14 = int_to_ptr.vmem [resolvable:$true] %s431_s14 }
  0x64   : > { %s1697_s30 = scalar_lea.hbm %s2630_s7, 256 }
  0x65   : > { %p1698_p13 = scmp.ne.s32.totalorder %s2630_s7, %s1697_s30  ;;  %p1704_p5 = scmp.lt.u32.totalorder %s1697_s30, %s2630_s7 }
  0x67   : > { %p1700_p0 = pnand %p1698_p13, %p2182_p8 }
  0x69   : > { %p1701_p2 = pneg %p1700_p0 }
  0x6b   : > { %p1706_p7 = pnand %p1704_p5, %p1701_p2 }
  0x6d   : > { %1709 = shalt.err (!%p1706_p7)
}
  0x6e   : > { %s1710_s15 = scalar_lea.vmem %s407_s20, 256  ;;  %p1718_p12 = scmp.lt.s32.totalorder %s407_s20, %s407_s20 }
  0x6f   : > { %p1711_p9 = scmp.ne.s32.totalorder %s407_s20, %s1710_s15  ;;  %p1719_p4 = scmp.lt.s32.totalorder %s1710_s15, %s1710_s15 }
  0x71   : > { %p1713_p10 = pnand %p1711_p9, %p2182_p8  ;;  %p1720_p1 = por %p1719_p4, %p1718_p12 }
  0x73   : > { %p1714_p11 = pneg %p1713_p10 }
  0x75   : > { %p1721_p3 = pnand %p1720_p1, %p1714_p11 }
  0x77   : > { %1724 = shalt.err (!%p1721_p3)
}
  0x78   : > { %1493 = dma.hbm_to_vmem [thread:$0]  (!%p2168_p6), %s2630_s7, 256, %s407_s20, [#allocation15], %s2644_s26, %s2644_s26, %s2047_s12  }
  0x79   : > { %s1725_s28 = scalar_lea.hbm %s2632_s9, 128 }
  0x7a   : > { %p1726_p1 = scmp.ne.s32.totalorder %s2632_s9, %s1725_s28  ;;  %p1732_p0 = scmp.lt.u32.totalorder %s1725_s28, %s2632_s9 }
  0x7c   : > { %p1728_p3 = pnand %p1726_p1, %p2182_p8 }
  0x7e   : > { %p1729_p13 = pneg %p1728_p3 }
  0x80   : > { %p1734_p2 = pnand %p1732_p0, %p1729_p13 }
  0x82   : > { %1737 = shalt.err (!%p1734_p2)
}
  0x83   : > { %s1738_s17 = scalar_lea.vmem %s432_s14, 128  ;;  %p1746_p10 = scmp.lt.s32.totalorder %s432_s14, %s432_s14 }
  0x84   : > { %p1739_p5 = scmp.ne.s32.totalorder %s432_s14, %s1738_s17  ;;  %p1747_p11 = scmp.lt.s32.totalorder %s1738_s17, %s1738_s17 }
  0x86   : > { %p1741_p7 = pnand %p1739_p5, %p2182_p8  ;;  %p1748_p12 = por %p1747_p11, %p1746_p10 }
  0x88   : > { %p1742_p9 = pneg %p1741_p7 }
  0x8a   : > { %p1749_p4 = pnand %p1748_p12, %p1742_p9 }
  0x8c   : > { %1752 = shalt.err (!%p1749_p4)
}
  0x8d   : > { %1499 = dma.hbm_to_vmem [thread:$0]  (!%p2168_p6), %s2632_s9, 128, %s432_s14, [#allocation18]  }
  0x8e   : > { %s2050_s15 = smov [#allocation7]   ;;  %s2051_s1 = smov [#allocation10]  }
  0x8f   : > { %s346_s0 = sshll.u32 %s2050_s15, 4  ;;  %s367_s3 = sshll.u32 %s2051_s1, 4  ;;  %s347_s0 = int_to_ptr.vmem [resolvable:$true] %s346_s0  ;;  %s368_s3 = int_to_ptr.vmem [resolvable:$true] %s367_s3 }
  0x90   : > { %s1753_s18 = scalar_lea.hbm %s2625_s2, 128 }
  0x91   : > { %p1754_p1 = scmp.ne.s32.totalorder %s2625_s2, %s1753_s18  ;;  %p1760_p0 = scmp.lt.u32.totalorder %s1753_s18, %s2625_s2 }
  0x93   : > { %p1756_p3 = pnand %p1754_p1, %p2182_p8 }
  0x95   : > { %p1757_p13 = pneg %p1756_p3 }
  0x97   : > { %p1762_p2 = pnand %p1760_p0, %p1757_p13 }
  0x99   : > { %1765 = shalt.err (!%p1762_p2)
}
  0x9a   : > { %s1766_s14 = scalar_lea.vmem %s347_s0, 128  ;;  %p1774_p10 = scmp.lt.s32.totalorder %s347_s0, %s347_s0 }
  0x9b   : > { %p1767_p5 = scmp.ne.s32.totalorder %s347_s0, %s1766_s14  ;;  %p1775_p11 = scmp.lt.s32.totalorder %s1766_s14, %s1766_s14 }
  0x9d   : > { %p1769_p7 = pnand %p1767_p5, %p2182_p8  ;;  %p1776_p12 = por %p1775_p11, %p1774_p10 }
  0x9f   : > { %p1770_p9 = pneg %p1769_p7 }
  0xa1   : > { %p1777_p4 = pnand %p1776_p12, %p1770_p9 }
  0xa3   : > { %1780 = shalt.err (!%p1777_p4)
}
  0xa4   : > { %1478 = dma.hbm_to_vmem [thread:$0]  (!%p2168_p6), %s2625_s2, 128, %s347_s0, [#allocation6]  }
  0xa5   : > { %s1781_s27 = scalar_lea.hbm %s2627_s4, 256 }
  0xa6   : > { %p1782_p1 = scmp.ne.s32.totalorder %s2627_s4, %s1781_s27  ;;  %p1788_p0 = scmp.lt.u32.totalorder %s1781_s27, %s2627_s4 }
  0xa8   : > { %p1784_p3 = pnand %p1782_p1, %p2182_p8 }
  0xaa   : > { %p1785_p13 = pneg %p1784_p3 }
  0xac   : > { %p1790_p2 = pnand %p1788_p0, %p1785_p13 }
  0xae   : > { %1793 = shalt.err (!%p1790_p2)
}
  0xaf   : > { %s1794_s16 = scalar_lea.vmem %s368_s3, 256  ;;  %p1802_p10 = scmp.lt.s32.totalorder %s368_s3, %s368_s3 }
  0xb0   : > { %p1795_p5 = scmp.ne.s32.totalorder %s368_s3, %s1794_s16  ;;  %p1803_p11 = scmp.lt.s32.totalorder %s1794_s16, %s1794_s16 }
  0xb2   : > { %p1797_p7 = pnand %p1795_p5, %p2182_p8  ;;  %p1804_p12 = por %p1803_p11, %p1802_p10 }
  0xb4   : > { %p1798_p9 = pneg %p1797_p7 }
  0xb6   : > { %p1805_p4 = pnand %p1804_p12, %p1798_p9 }
  0xb8   : > { %1808 = shalt.err (!%p1805_p4)
}
  0xb9   : > { %1484 = dma.hbm_to_vmem [thread:$0]  (!%p2168_p6), %s2627_s4, 256, %s368_s3, [#allocation9], %s2644_s26, %s2644_s26, %s2047_s12  }
  0xba   : > { %s2052_s14 = smov [#allocation13]   ;;  %s2053_s30 = smov [#allocation16]  }
  0xbb   : > { %s393_s20 = sshll.u32 %s2052_s14, 4  ;;  %s420_s15 = sshll.u32 %s2053_s30, 4  ;;  %s394_s20 = int_to_ptr.vmem [resolvable:$true] %s393_s20  ;;  %s421_s15 = int_to_ptr.vmem [resolvable:$true] %s420_s15 }
  0xbc   : > { %s1809_s28 = scalar_lea.hbm %s2629_s6, 256 }
  0xbd   : > { %p1810_p1 = scmp.ne.s32.totalorder %s2629_s6, %s1809_s28  ;;  %p1816_p0 = scmp.lt.u32.totalorder %s1809_s28, %s2629_s6 }
  0xbf   : > { %p1812_p3 = pnand %p1810_p1, %p2182_p8 }
  0xc1   : > { %p1813_p13 = pneg %p1812_p3 }
  0xc3   : > { %p1818_p2 = pnand %p1816_p0, %p1813_p13 }
  0xc5   : > { %1821 = shalt.err (!%p1818_p2)
}
  0xc6   : > { %s1822_s3 = scalar_lea.vmem %s394_s20, 256  ;;  %p1830_p10 = scmp.lt.s32.totalorder %s394_s20, %s394_s20 }
  0xc7   : > { %p1823_p5 = scmp.ne.s32.totalorder %s394_s20, %s1822_s3  ;;  %p1831_p11 = scmp.lt.s32.totalorder %s1822_s3, %s1822_s3 }
  0xc9   : > { %p1825_p7 = pnand %p1823_p5, %p2182_p8  ;;  %p1832_p12 = por %p1831_p11, %p1830_p10 }
  0xcb   : > { %p1826_p9 = pneg %p1825_p7 }
  0xcd   : > { %p1833_p4 = pnand %p1832_p12, %p1826_p9 }
  0xcf   : > { %1836 = shalt.err (!%p1833_p4)
}
  0xd0   : > { %1490 = dma.hbm_to_vmem [thread:$0]  (!%p2168_p6), %s2629_s6, 256, %s394_s20, [#allocation12], %s2644_s26, %s2644_s26, %s2047_s12  }
  0xd1   : > { %s1837_s1 = scalar_lea.hbm %s2631_s8, 128 }
  0xd2   : > { %p1838_p1 = scmp.ne.s32.totalorder %s2631_s8, %s1837_s1  ;;  %p1844_p0 = scmp.lt.u32.totalorder %s1837_s1, %s2631_s8 }
  0xd4   : > { %p1840_p3 = pnand %p1838_p1, %p2182_p8 }
  0xd6   : > { %p1841_p13 = pneg %p1840_p3 }
  0xd8   : > { %p1846_p2 = pnand %p1844_p0, %p1841_p13 }
  0xda   : > { %1849 = shalt.err (!%p1846_p2)
}
  0xdb   : > { %s1850_s29 = scalar_lea.vmem %s421_s15, 128  ;;  %p1858_p10 = scmp.lt.s32.totalorder %s421_s15, %s421_s15 }
  0xdc   : > { %p1851_p5 = scmp.ne.s32.totalorder %s421_s15, %s1850_s29  ;;  %p1859_p11 = scmp.lt.s32.totalorder %s1850_s29, %s1850_s29 }
  0xde   : > { %p1853_p7 = pnand %p1851_p5, %p2182_p8  ;;  %p1860_p12 = por %p1859_p11, %p1858_p10 }
  0xe0   : > { %p1854_p9 = pneg %p1853_p7 }
  0xe2   : > { %p1861_p4 = pnand %p1860_p12, %p1854_p9 }
  0xe4   : > { %1864 = shalt.err (!%p1861_p4)
}
  0xe5   : > { %1496 = dma.hbm_to_vmem [thread:$0]  (!%p2168_p6), %s2631_s8, 128, %s421_s15, [#allocation15]  }
  0xe6   : > { %s2054_s3 = smov [#allocation19]   ;;  %s2055_s17 = smov [#allocation20]  }
  0xe7   : > { %s442_s0 = sshll.u32 %s2054_s3, 4  ;;  %s453_s14 = sshll.u32 %s2055_s17, 4  ;;  %s443_s0 = int_to_ptr.vmem [resolvable:$true] %s442_s0  ;;  %s454_s14 = int_to_ptr.vmem [resolvable:$true] %s453_s14 }
  0xe8   : > { %s1865_s27 = scalar_lea.hbm %s2633_s10, 128 }
  0xe9   : > { %p1866_p1 = scmp.ne.s32.totalorder %s2633_s10, %s1865_s27  ;;  %p1872_p0 = scmp.lt.u32.totalorder %s1865_s27, %s2633_s10 }
  0xeb   : > { %p1868_p3 = pnand %p1866_p1, %p2182_p8 }
  0xed   : > { %p1869_p13 = pneg %p1868_p3 }
  0xef   : > { %p1874_p2 = pnand %p1872_p0, %p1869_p13 }
  0xf1   : > { %1877 = shalt.err (!%p1874_p2)
}
  0xf2   : > { %s1878_s15 = scalar_lea.vmem %s443_s0, 128  ;;  %p1886_p10 = scmp.lt.s32.totalorder %s443_s0, %s443_s0 }
  0xf3   : > { %p1879_p5 = scmp.ne.s32.totalorder %s443_s0, %s1878_s15  ;;  %p1887_p11 = scmp.lt.s32.totalorder %s1878_s15, %s1878_s15 }
  0xf5   : > { %p1881_p7 = pnand %p1879_p5, %p2182_p8  ;;  %p1888_p12 = por %p1887_p11, %p1886_p10 }
  0xf7   : > { %p1882_p9 = pneg %p1881_p7 }
  0xf9   : > { %p1889_p4 = pnand %p1888_p12, %p1882_p9 }
  0xfb   : > { %1892 = shalt.err (!%p1889_p4)
}
  0xfc   : > { %1502 = dma.hbm_to_vmem [thread:$0]  (!%p2168_p6), %s2633_s10, 128, %s443_s0, [#allocation18]  }
  0xfd   : > { %s1893_s30 = scalar_lea.hbm %s2634_s11, 128 }
  0xfe   : > { %p1894_p1 = scmp.ne.s32.totalorder %s2634_s11, %s1893_s30  ;;  %p1900_p0 = scmp.lt.u32.totalorder %s1893_s30, %s2634_s11 }
 0x100   : > { %p1896_p3 = pnand %p1894_p1, %p2182_p8 }
 0x102   : > { %p1897_p13 = pneg %p1896_p3 }
 0x104   : > { %p1902_p2 = pnand %p1900_p0, %p1897_p13 }
 0x106   : > { %1905 = shalt.err (!%p1902_p2)
}
 0x107   : > { %s1906_s19 = scalar_lea.vmem %s454_s14, 128  ;;  %p1914_p10 = scmp.lt.s32.totalorder %s454_s14, %s454_s14 }
 0x108   : > { %p1907_p5 = scmp.ne.s32.totalorder %s454_s14, %s1906_s19  ;;  %p1915_p11 = scmp.lt.s32.totalorder %s1906_s19, %s1906_s19 }
 0x10a   : > { %p1909_p7 = pnand %p1907_p5, %p2182_p8  ;;  %p1916_p12 = por %p1915_p11, %p1914_p10 }
 0x10c   : > { %p1910_p9 = pneg %p1909_p7 }
 0x10e   : > { %p1917_p4 = pnand %p1916_p12, %p1910_p9 }
 0x110   : > { %1920 = shalt.err (!%p1917_p4)
}
 0x111   : > { %s2657_s25 = sld [smem:[#allocation31_spill]]  ;;  %s1317_s15 = sadd.s32 4294967294, %s2041_s24  }
 0x112   : > { %1505 = dma.hbm_to_vmem [thread:$0]  (!%p2168_p6), %s2634_s11, 128, %s454_s14, [#allocation21]  }
 0x113   : > { %s2408_s13 = sadd.s32 1, %s2041_s24   ;;  %s41_s20 = sadd.s32 1, %s2037_s23 }
 0x114   : > { %s38_s16 = ssub.s32 %s2041_s24, %s2408_s13  ;;  %p48_p8 = scmp.ne.s32.totalorder %s2037_s23, %s2033_s22 }
 0x115   : > { %p39_p1 = scmp.eq.s32.totalorder %s38_s16, 0  ;;  %p49_p3 = scmp.eq.s32.totalorder %s2041_s24, 0 }
 0x116   : > { %p54_p13 = scmp.ne.s32.totalorder %s2033_s22, %s2029_s21  ;;  %p315_p9 = scmp.eq.s32.totalorder %s1317_s15, 1 }
 0x117   : > { %p309_p0 = scmp.eq.s32.totalorder %s2657_s25, 1  ;;  %p50_p2 = por %p49_p3, %p48_p8 }
 0x118   : > { %s2420_s3 = scalar_select %p39_p1, %s2037_s23, %s41_s20  }
 0x119   : > { %p2658_p5 = scmp.eq.s32.totalorder %s2657_s25, 0  ;;  %p2428_p6 = por %p309_p0, %p48_p8 }
 0x11a   : > { %p1525_p10 = scmp.lt.s32.totalorder %s2041_s24, 2  ;;  %s464_s30 = sand.u32 1, %s2037_s23  }
 0x11b   : > { %p2424_p7 = por %p2658_p5, %p54_p13  ;;  %p2434_p11 = por %p315_p9, %p54_p13 }
 0x11c   : > { %s2660_s14 = scalar_select %p2428_p6, 1, 0 }
 0x11d   : > { %s2661_s1 = scalar_select %p2434_p11, 1, 0 }
 0x11e   : > { %s1331_s27 = sshll.u32 %s464_s30, 4  ;;  %s1362_s28 = sshll.u32 %s2041_s24, 8 }
 0x11f   : > { %s2662_s0 = sld [smem:[#allocation33_spill]]  ;;  %s468_s25 = scalar_lea.vmem [#allocation2], %s1331_s27 }
 0x120   : > { %s475_s20 = sshll.u32 %s468_s25, 4  ;;  %p2444_p12 = pnand %p1525_p10, %p50_p2  ;;  %s2448_s20 = int_to_ptr.vmem [resolvable:$true] %s475_s20 }
 0x121   : > { %s2450_s16 = scalar_lea.sflag [#allocation3], %s464_s30 }
 0x122   : > { %p1923_p8 = pneg %p2444_p12 }
 0x125   : > { %s2442_s29 = scalar_lea.hbm %s2662_s0, %s1362_s28  ;;  %s1926_s18 = scalar_lea.hbm %s2662_s0, 512 }
 0x126   : > { %s1921_s26 = scalar_lea.hbm %s2442_s29, 256  ;;  %p1927_p13 = scmp.lt.u32.totalorder %s2442_s29, %s2662_s0 }
 0x127   : > { %p1922_p4 = scmp.ne.s32.totalorder %s2442_s29, %s1921_s26  ;;  %p1928_p0 = scmp.lt.u32.totalorder %s1926_s18, %s1921_s26 }
 0x128   : > { %p1930_p5 = scmp.lt.u32.totalorder %s1921_s26, %s2442_s29 }
 0x129   : > { %p1924_p1 = pnand %p1923_p8, %p1922_p4  ;;  %p1929_p2 = por %p1928_p0, %p1927_p13 }
 0x12b   : > { %p1925_p3 = pneg %p1924_p1  ;;  %p1931_p9 = por %p1930_p5, %p1929_p2 }
 0x12d   : > { %p1932_p10 = pnand %p1931_p9, %p1925_p3 }
 0x12f   : > { %1935 = shalt.err (!%p1932_p10)
}
 0x130   : > { %s1936_s30 = scalar_lea.vmem %s2448_s20, 256  ;;  %s2056_s27 = smov [#allocation2]  }
 0x131   : > { %p1937_p4 = scmp.ne.s32.totalorder %s2448_s20, %s1936_s30  ;;  %s1941_s28 = sshll.u32 %s2056_s27, 4  ;;  %s1942_s28 = int_to_ptr.vmem [resolvable:$false] %s1941_s28 }
 0x132   : > { %s1943_s19 = scalar_lea.vmem %s1942_s28, 512  ;;  %p1944_p6 = scmp.lt.s32.totalorder %s2448_s20, %s1942_s28 }
 0x133   : > { %p1939_p1 = pnand %p1937_p4, %p1923_p8  ;;  %p1945_p13 = scmp.lt.s32.totalorder %s1943_s19, %s1936_s30 }
 0x135   : > { %p1940_p11 = pneg %p1939_p1  ;;  %p1946_p0 = por %p1945_p13, %p1944_p6 }
 0x137   : > { %p1947_p2 = pnand %p1946_p0, %p1940_p11 }
 0x139   : > { %1950 = shalt.err (!%p1947_p2)
}
 0x13a   : > { %s2664_s26 = smov 128   ;;  %s2665_s18 = sld [smem:[#allocation32_spill]] }
 0x13b   : > { %1509 = dma.hbm_to_vmem [thread:$0]  (!%p2444_p12), %s2442_s29, 256, %s2448_s20, %s2450_s16, %s2664_s26, %s2664_s26, %s2047_s12  }
 0x140   : > { %p2666_p8 = scmp.ne.s32.totalorder %s2665_s18, 0 }
 0x141   : > { %s2484_s25 = sand.u32 (!%p2666_p8), 1, %s2033_s22  }
 0x142   : > { %487 = sbr.rel (%p2666_p8) target bundleno = 1571 (0x623), region = 68  ;;  %s1335_s30 = sshll.u32 (!%p2666_p8), %s2484_s25, 4 }
 0x143   : > { %s490_s27 = scalar_lea.sflag (!%p2666_p8), [#allocation3], %s2484_s25  ;;  %s493_s15 = scalar_lea.vmem (!%p2666_p8), [#allocation2], %s1335_s30 }
 0x149   : > { %1996 = dma.done.wait (%p2424_p7), %s490_s27, 256  }
 0x14a   : > { %1998 = vsyncadd (%p2424_p7), %s490_s27, 4294967040  ;;  %s2667_s12 = sld [smem:[#allocation31_spill]] }
 0x150   : > { %p2668_p6 = scmp.eq.s32.totalorder %s2667_s12, 0 }
 0x152   : > { %2000 = dma.done.wait (%p2668_p6), [#allocation6], 144   ;;  %p2669_p11 = pmov %p2668_p6 }
 0x153   : > { %p2670_p12 = pmov %p2668_p6 }
 0x154   : > { %2002 = vsyncadd (%p2669_p11), [#allocation6], 4294967152 }
 0x155   : > { %2004 = dma.done.wait (%p2670_p12), [#allocation9], 384   ;;  %p2671_p3 = pmov %p2668_p6 }
 0x157   : > { %2006 = vsyncadd (%p2671_p3), [#allocation9], 4294966912  ;;  %p2672_p5 = pmov %p2671_p3 }
 0x158   : > { %p2673_p9 = pmov %p2671_p3 }
 0x159   : > { %2008 = dma.done.wait (%p2672_p5), [#allocation12], 512  }
 0x15a   : > { %2010 = vsyncadd (%p2673_p9), [#allocation12], 4294966784  ;;  %p2674_p7 = pmov %p2671_p3 }
 0x15b   : > { %p2675_p10 = pmov %p2671_p3 }
 0x15c   : > { %2012 = dma.done.wait (%p2674_p7), [#allocation15], 384  }
 0x15d   : > { %2014 = vsyncadd (%p2675_p10), [#allocation15], 4294966912  ;;  %p2676_p4 = pmov %p2671_p3 }
 0x15e   : > { %p2677_p1 = pmov %p2671_p3 }
 0x15f   : > { %2016 = dma.done.wait (%p2676_p4), [#allocation18], 256  }
 0x160   : > { %2018 = vsyncadd (%p2677_p1), [#allocation18], 4294967040  ;;  %p2678_p13 = pmov %p2677_p1 }
 0x161   : > { %p2679_p0 = pmov %p2677_p1 }
 0x162   : > { %2020 = dma.done.wait (%p2678_p13), [#allocation21], 128  }
 0x163   : > { %2022 = vsyncadd (%p2679_p0), [#allocation21], 4294967168  ;;  %v2057_v0 = vmov 0.0|0.0   ;;  %vm2058_vm0 = vmmov 0   ;;  %v2059_v1 = vmov 0.0   ;;  %v2524_v2 = vld [vmem:[%s493_s15] sm:$0xff]  ;;  %v662_v12 = vlaneseq }
 0x164   : > { %1412 = vmatprep.subr.bf16.mxu0 %v2057_v0  ;;  %1383 = vmatprep.mubr.msk.f32.mxu0 %vm2058_vm0, %v2059_v1  ;;  %v2526_v3 = vld [vmem:[%s493_s15 + $0x8] sm:$0xff]  ;;  %v580_v5 = vld [vmem:[#allocation5] sm:$0x1]  ;;  %vm581_vm1 = vcmask 130048   ;;  %vm655_vm2 = vcmask 516096   ;;  %vm668_vm3 = vcmask 523264  }
 0x165   : > { %1415 = vmatprep.subr.bf16.mxu1 %v2057_v0  ;;  %1390 = vmatprep.mubr.msk.f32.mxu1 %vm2058_vm0, %v2059_v1  ;;  %v2530_v4 = vpack.c.bf16 %v2526_v3, %v2524_v2  ;;  %v663_v13 = vshrl.u32 %v662_v12, 7  ;;  %v896_v19 = vsel %vm668_vm3, %v2524_v2, 0.0  ;;  %v899_v23 = vsel %vm668_vm3, %v2526_v3, 0.0  ;;  %v685_v37 = vld [vmem:[#allocation7] sm:$0xff]  ;;  %v904_v38 = vld [vmem:[#allocation16] sm:$0xff]  ;;  %v686_v41 = vld [vmem:[#allocation8] sm:$0xff] }
 0x166   : > { %v760_v39 = vld [vmem:[#allocation10] sm:$0xff]  ;;  %vm764_vm4 = vcmask 64512   ;;  %v2060_v40 = vmov 0   ;;  %v905_v45 = vld [vmem:[#allocation17] sm:$0xff]  ;;  %vm846_vm5 = vcmask 7168   ;;  %s1363_s17 = sshll.u32 %s2667_s12, 8 }
 0x167   : > { %1414 = vmatpush3.bf16.msra.mxu0 %v2530_v4  ;;  %v2534_v14 = vsub.s32 0, %v663_v13  ;;  %1589 = vset.pattern.permute.xlu0 %v2060_v40  ;;  %v761_v46 = vld [vmem:[#allocation10 + $0x8] sm:$0xff]  ;;  %s577_s29 = scalar_lea.vmem [#allocation22], %s1335_s30  ;;  %s2680_s19 = sld [smem:[#allocation36_spill]] }
 0x168   : > { %1590 = vset.pattern.permute.xlu1 %v2060_v40  ;;  %s1139_s20 = sshll.u32 %s577_s29, 4  ;;  %s1126_s18 = scalar_lea.sflag [#allocation4], %s2484_s25  ;;  %s2575_s20 = int_to_ptr.vmem [resolvable:$true] %s1139_s20 }
 0x169   : > { %s1951_s30 = scalar_lea.vmem %s2575_s20, 256  ;;  %p2681_p8 = scmp.ne.s32.totalorder %s2660_s14, 0 }
 0x16a   : > { %1384 = vmatmul.mubr.msk.f32.vlgmr.msra.gmra.mrb[0].mxu0 %vm581_vm1, %v580_v5  ;;  %p1952_p2 = scmp.ne.s32.totalorder %s2575_s20, %s1951_s30  ;;  %s2061_s27 = smov [#allocation22]  }
 0x16b   : > { %1395 = vmatprep.mubr.msk.f32.mxu0 %vm764_vm4, %v760_v39  ;;  %s1955_s15 = sshll.u32 %s2061_s27, 4  ;;  %s1956_s15 = int_to_ptr.vmem [resolvable:$false] %s1955_s15 }
 0x16c   : > { %p1953_p6 = pnand %p1952_p2, %p2681_p8  ;;  %s1957_s12 = scalar_lea.vmem %s1956_s15, 512 }
 0x16d   : > { %s2573_s26 = scalar_lea.hbm %s2680_s19, %s1363_s17  ;;  %p1958_p12 = scmp.lt.s32.totalorder %s2575_s20, %s1956_s15 }
 0x16e   : > { %p1954_p11 = pneg %p1953_p6  ;;  %p1959_p3 = scmp.lt.s32.totalorder %s1957_s12, %s1951_s30 }
 0x170   : > { %p1960_p5 = por %p1959_p3, %p1958_p12 }
 0x172   : > { %p1961_p9 = pnand %p1960_p5, %p1954_p11 }
 0x23d   : > { %v651_v6 = vpop.f32.mrb[0].mxu0 }
 0x23e   : > { %v1385_v7 = vpop.f32.mrb[1].mxu0  ;;  %v656_v8 = vsel %vm655_vm2, %v651_v6, -inf }
 0x23f   : > { %657 = vmax.xlane.f32.xlu0 %v656_v8 }
 0x2cc   : > { %v658_v9 = vpop.xlane.xlu0 %657 }
 0x2cd   : > { %v659_v10 = vsub.f32 %v651_v6, %v658_v9  ;;  %v1012_v6 = vld [vmem:[#allocation20] sm:$0xff] }
 0x2cf   : > { %v660_v11 = vmul.f32 1.442695, %v659_v10 }
 0x2d1   : > { %1591 = vpow2.f32 %v660_v11 }
 0x2db   : > { %v1592_v15 = vpop.eup %1591 }
 0x2dc   : > { %v675_v16 = vsel %vm655_vm2, %v1592_v15, 0.0  ;;  %v665_v17 = vrot.slane %v1592_v15, %v2534_v14 }
 0x2dd   : > { %676 = vadd.xlane.f32.xlu0 %v675_v16 }
 0x2de   : > { %v666_v18 = vmul.f32 %v665_v17, %v2524_v2  ;;  %v667_v21 = vmul.f32 %v665_v17, %v2526_v3  ;;  %v998_v17 = vld [vmem:[#allocation19] sm:$0xff] }
 0x2e0   : > { %v669_v20 = vsel %vm668_vm3, %v666_v18, 0.0  ;;  %v672_v22 = vsel %vm668_vm3, %v667_v21, 0.0 }
 0x2e1   : > { %670 = vadd.xlane.f32.xlu1 %v669_v20  ;;  %897 = vadd.xlane.f32.xlu0 %v896_v19 }
 0x2e5   : > { %673 = vadd.xlane.f32.xlu1 %v672_v22 }
 0x2e9   : > { %900 = vadd.xlane.f32.xlu1 %v899_v23 }
 0x36a   : > { %v677_v24 = vpop.xlane.xlu0 %676 }
 0x36b   : > { %v681_v25 = vrot.slane %v677_v24, %v2534_v14 }
 0x36d   : > { %1593 = vrcp.f32 %v681_v25 }
 0x36e   : > { %v671_v26 = vpop.xlane.xlu1 %670  ;;  %v898_v28 = vpop.xlane.xlu0 %897 }
 0x36f   : > { %v902_v33 = vmul.f32 0.015625, %v898_v28  ;;  %v762_v28 = vld [vmem:[#allocation11] sm:$0xff] }
 0x372   : > { %v674_v27 = vpop.xlane.xlu1 %673 }
 0x376   : > { %v901_v29 = vpop.xlane.xlu1 %900 }
 0x377   : > { %v1594_v30 = vpop.eup %1593  ;;  %v903_v34 = vmul.f32 0.015625, %v901_v29 }
 0x378   : > { %v683_v31 = vmul.f32 %v1594_v30, %v671_v26  ;;  %v684_v32 = vmul.f32 %v1594_v30, %v674_v27  ;;  %v763_v27 = vld [vmem:[#allocation11 + $0x8] sm:$0xff] }
 0x379   : > { %v1419_v36 = vpack.c.bf16 %v903_v34, %v902_v33 }
 0x37a   : > { %v1416_v35 = vpack.c.bf16 %v684_v32, %v683_v31 }
 0x37c   : > { %1417 = vmatpush3.bf16.msra.mxu1 %v1416_v35 }
 0x37d   : > { %1418 = vmatprep.subr.bf16.mxu1 %v2057_v0 }
 0x37f   : > { %1391 = vmatmul.mubr.msk.f32.vlgmr.msra.gmra.mrb[0].mxu1 %vm581_vm1, %v685_v37 }
 0x380   : > { %1420 = vmatpush3.bf16.msra.mxu1 %v1419_v36  ;;  %1402 = vmatprep.mubr.msk.f32.mxu1 %vm2058_vm0, %v2059_v1 }
 0x383   : > { %1403 = vmatmul.mubr.msk.f32.vlgmr.msra.gmra.mrb[2].mxu1 %vm581_vm1, %v904_v38 }
 0x452   : > { %v756_v42 = vpop.f32.mrb[0].mxu1 }
 0x453   : > { %v757_v43 = vadd.f32 %v756_v42, %v686_v41  ;;  %v1392_v44 = vpop.f32.mrb[1].mxu1 }
 0x455   : > { %1393 = vmatprep.subr.mxu0 %v757_v43 }
 0x456   : > { %1394 = vmatpush3.msra.mxu0 %v757_v43  ;;  %v975_v47 = vpop.f32.mrb[2].mxu1 }
 0x457   : > { %v976_v48 = vadd.f32 %v975_v47, %v905_v45  ;;  %1396 = vmatmul.mubr.msk.f32.vlgmr.msra.gmra.mrb[2].mxu0 %vm764_vm4, %v761_v46  ;;  %v1404_v49 = vpop.f32.mrb[3].mxu1  ;;  %1421 = vmatprep.subr.bf16.mxu0 %v2057_v0 }
 0x458   : > { %1423 = vmatpush3.bf16.msra.mxu0 %v2530_v4  ;;  %1409 = vmatprep.mubr.msk.f32.mxu0 %vm2058_vm0, %v2059_v1 }
 0x459   : > { %v979_v50 = vsel %vm846_vm5, %v976_v48, -inf }
 0x45a   : > { %v980_v51 = vrot.slane %v979_v50, 4 }
 0x45c   : > { %v981_v52 = vmax.f32 %v979_v50, %v980_v51 }
 0x45e   : > { %v982_v53 = vrot.slane %v981_v52, 2 }
 0x460   : > { %v983_v54 = vmax.f32 %v981_v52, %v982_v53 }
 0x462   : > { %v984_v55 = vrot.slane %v983_v54, 1 }
 0x464   : > { %v985_v56 = vmax.f32 %v983_v54, %v984_v55 }
 0x466   : > { %v986_v57 = vsub.f32 %v976_v48, %v985_v56 }
 0x468   : > { %v987_v58 = vmul.f32 1.442695, %v986_v57 }
 0x46a   : > { %1595 = vpow2.f32 %v987_v58 }
 0x474   : > { %v1596_v59 = vpop.eup %1595 }
 0x475   : > { %v989_v60 = vsel %vm846_vm5, %v1596_v59, 0.0 }
 0x476   : > { %v990_v61 = vrot.slane %v989_v60, 4 }
 0x478   : > { %v991_v62 = vadd.f32 %v990_v61, %v989_v60  ;;  %v877_v60 = vld [vmem:[#allocation13 + $0x8] sm:$0xff] }
 0x47a   : > { %v992_v63 = vrot.slane %v991_v62, 2 }
 0x47c   : > { %v993_v0 = vadd.f32 %v992_v63, %v991_v62  ;;  %v880_v63 = vld [vmem:[#allocation14] sm:$0xff] }
 0x47e   : > { %v994_v4 = vrot.slane %v993_v0, 1 }
 0x480   : > { %v995_v1 = vadd.f32 %v994_v4, %v993_v0  ;;  %v881_v0 = vld [vmem:[#allocation14 + $0x8] sm:$0xff] }
 0x482   : > { %1597 = vrcp.f32 %v995_v1 }
 0x48c   : > { %v1598_v5 = vpop.eup %1597 }
 0x48d   : > { %v997_v7 = vmul.f32 %v1598_v5, %v1596_v59  ;;  %v876_v59 = vld [vmem:[#allocation13] sm:$0xff] }
 0x48f   : > { %1001 = vperm.xlu0 %1589, %v997_v7   ;;  %v1013_v8 = vmul.f32 %v1012_v6, %v997_v7 }
 0x491   : > { %v1014_v9 = vsel %vm846_vm5, %v1013_v8, 0.0 }
 0x492   : > { %v1015_v10 = vrot.slane %v1014_v9, 4 }
 0x494   : > { %v1016_v11 = vadd.f32 %v1015_v10, %v1014_v9 }
 0x496   : > { %v1017_v12 = vrot.slane %v1016_v11, 2 }
 0x498   : > { %v1018_v13 = vadd.f32 %v1017_v12, %v1016_v11 }
 0x49a   : > { %v1019_v15 = vrot.slane %v1018_v13, 1 }
 0x49c   : > { %v1020_v16 = vadd.f32 %v1019_v15, %v1018_v13 }
 0x49e   : > { %1023 = vperm.xlu1 %1590, %v1020_v16  }
 0x50e   : > { %v1002_v18 = vpop.permute.xlu0 %1001 }
 0x50f   : > { %v1004_v19 = vmul.f32 %v1002_v18, %v998_v17 }
 0x511   : > { %v1005_v20 = vsel %vm581_vm1, %v1004_v19, 0.0 }
 0x512   : > { %v1006_v21 = vrot.slane %v1005_v20, 4 }
 0x514   : > { %v1007_v22 = vadd.f32 %v1006_v21, %v1005_v20 }
 0x516   : > { %v1008_v23 = vrot.slane %v1007_v22, 2 }
 0x518   : > { %v1009_v24 = vadd.f32 %v1008_v23, %v1007_v22 }
 0x51a   : > { %v1010_v25 = vrot.slane %v1009_v24, 1 }
 0x51c   : > { %v1011_v26 = vadd.f32 %v1010_v25, %v1009_v24 }
 0x51d   : > { %v1024_v16 = vpop.permute.xlu1 %1023 }
 0x51e   : > { %1410 = vmatmul.mubr.msk.f32.vlgmr.msra.gmra.mrb[4].mxu0 %vm581_vm1, %v1011_v26 }
 0x52a   : > { %v1397_v29 = vpop.f32.mrb[2].mxu0 }
 0x52b   : > { %v843_v30 = vadd.f32 %v1397_v29, %v763_v27  ;;  %v837_v31 = vpop.f32.mrb[3].mxu0 }
 0x52c   : > { %v838_v32 = vadd.f32 %v837_v31, %v762_v28 }
 0x52d   : > { %v848_v33 = vsel %vm846_vm5, %v843_v30, 0.0 }
 0x52e   : > { %v847_v34 = vsel %vm846_vm5, %v838_v32, 0.0 }
 0x52f   : > { %v849_v35 = vadd.f32 %v848_v33, %v847_v34 }
 0x531   : > { %v850_v36 = vrot.slane %v849_v35, 4 }
 0x533   : > { %v851_v37 = vadd.f32 %v850_v36, %v849_v35 }
 0x535   : > { %v852_v38 = vrot.slane %v851_v37, 2 }
 0x537   : > { %v853_v39 = vadd.f32 %v852_v38, %v851_v37 }
 0x539   : > { %v854_v40 = vrot.slane %v853_v39, 1 }
 0x53b   : > { %v855_v41 = vadd.f32 %v854_v40, %v853_v39 }
 0x53d   : > { %v857_v42 = vmul.f32 0.0625, %v855_v41 }
 0x53f   : > { %v858_v43 = vsub.f32 %v838_v32, %v857_v42  ;;  %v859_v44 = vsub.f32 %v843_v30, %v857_v42 }
 0x541   : > { %v860_v45 = vmul.f32 %v858_v43, %v858_v43  ;;  %v861_v46 = vmul.f32 %v859_v44, %v859_v44 }
 0x543   : > { %v862_v47 = vsel %vm846_vm5, %v860_v45, 0.0  ;;  %v863_v48 = vsel %vm846_vm5, %v861_v46, 0.0 }
 0x544   : > { %v864_v49 = vadd.f32 %v863_v48, %v862_v47 }
 0x546   : > { %v865_v50 = vrot.slane %v864_v49, 4 }
 0x548   : > { %v866_v51 = vadd.f32 %v865_v50, %v864_v49 }
 0x54a   : > { %v867_v52 = vrot.slane %v866_v51, 2 }
 0x54c   : > { %v868_v53 = vadd.f32 %v867_v52, %v866_v51 }
 0x54e   : > { %v869_v54 = vrot.slane %v868_v53, 1 }
 0x550   : > { %v870_v55 = vadd.f32 %v869_v54, %v868_v53 }
 0x552   : > { %v871_v56 = vmul.f32 0.0625, %v870_v55 }
 0x554   : > { %v872_v57 = vadd.f32 1e-05, %v871_v56 }
 0x556   : > { %1599 = vrsqrt.f32 %v872_v57 }
 0x560   : > { %v1600_v58 = vpop.eup %1599 }
 0x561   : > { %v874_v61 = vmul.f32 %v1600_v58, %v858_v43  ;;  %v875_v62 = vmul.f32 %v1600_v58, %v859_v44 }
 0x563   : > { %v878_v4 = vmul.f32 %v876_v59, %v874_v61  ;;  %v879_v1 = vmul.f32 %v877_v60, %v875_v62 }
 0x565   : > { %v882_v5 = vadd.f32 %v880_v63, %v878_v4  ;;  %v883_v6 = vadd.f32 %v881_v0, %v879_v1 }
 0x567   : > { %v1352_v7 = vmul.f32 -1.442695, %v882_v5  ;;  %v1353_v8 = vmul.f32 -1.442695, %v883_v6 }
 0x569   : > { %1601 = vpow2.f32 %v1352_v7 }
 0x56a   : > { %1603 = vpow2.f32 %v1353_v8 }
 0x573   : > { %v1602_v9 = vpop.eup %1601 }
 0x574   : > { %v1604_v10 = vpop.eup %1603  ;;  %v890_v11 = vadd.f32 1.0, %v1602_v9 }
 0x575   : > { %v891_v12 = vadd.f32 1.0, %v1604_v10 }
 0x576   : > { %1605 = vrcp.f32 %v890_v11 }
 0x577   : > { %1607 = vrcp.f32 %v891_v12 }
 0x580   : > { %v1606_v13 = vpop.eup %1605 }
 0x581   : > { %1107 = vperm.xlu1 %1590, %v1606_v13   ;;  %v1608_v15 = vpop.eup %1607 }
 0x585   : > { %1112 = vperm.xlu1 %1590, %v1608_v15  }
 0x5f1   : > { %v1095_v17 = vpop.f32.mrb[4].mxu0 }
 0x5f2   : > { %v1096_v18 = vadd.f32 %v1095_v17, %v1024_v16  ;;  %v1411_v19 = vpop.f32.mrb[5].mxu0 }
 0x5f4   : > { %v1356_v20 = vmul.f32 -1.442695, %v1096_v18 }
 0x5f6   : > { %1609 = vpow2.f32 %v1356_v20 }
 0x600   : > { %v1610_v21 = vpop.eup %1609  ;;  %v1108_v23 = vpop.permute.xlu1 %1107 }
 0x601   : > { %v1102_v22 = vadd.f32 1.0, %v1610_v21 }
 0x603   : > { %1611 = vrcp.f32 %v1102_v22 }
 0x604   : > { %v1113_v26 = vpop.permute.xlu1 %1112 }
 0x60d   : > { %v1612_v24 = vpop.eup %1611 }
 0x60e   : > { %v1118_v25 = vrot.slane %v1612_v24, %v2534_v14 }
 0x610   : > { %v1119_v27 = vadd.f32 %v1118_v25, %v1108_v23  ;;  %v1120_v28 = vadd.f32 %v1118_v25, %v1113_v26 }
 0x612   : > { %v1121_v14 = vmul.f32 %v1119_v27, %v2524_v2  ;;  %v1122_v29 = vmul.f32 %v1120_v28, %v2526_v3 }
 0x614   : > { %1123 = vst.msk [vmem:[%s577_s29] sm:$0xff] %vm668_vm3, %v1121_v14  ;;  %1124 = vst.msk [vmem:[%s577_s29 + $0x8] sm:$0xff] %vm668_vm3, %v1122_v29 }
 0x615   : > { %1964 = shalt.err (!%p1961_p9)
}
 0x616   : > { %s1965_s17 = scalar_lea.hbm %s2573_s26, 256  ;;  %s1969_s28 = scalar_lea.hbm %s2680_s19, 512 }
 0x617   : > { %p1966_p7 = scmp.ne.s32.totalorder %s2573_s26, %s1965_s17  ;;  %p1970_p1 = scmp.lt.u32.totalorder %s2573_s26, %s2680_s19 }
 0x618   : > { %p1971_p13 = scmp.lt.u32.totalorder %s1969_s28, %s1965_s17  ;;  %p1973_p2 = scmp.lt.u32.totalorder %s1965_s17, %s2573_s26 }
 0x619   : > { %p1967_p10 = pnand %p1966_p7, %p2681_p8 }
 0x61a   : > { %p1972_p0 = por %p1971_p13, %p1970_p1 }
 0x61b   : > { %p1968_p4 = pneg %p1967_p10 }
 0x61c   : > { %p1974_p6 = por %p1973_p2, %p1972_p0 }
 0x61e   : > { %p1975_p11 = pnand %p1974_p6, %p1968_p4 }
 0x620   : > { %1978 = shalt.err (!%p1975_p11)
}
 0x621   : > { %s2062_s30 = smov 128   ;;  %s2063_s12 = smov 8  }
 0x622   : > { %1470 = dma.vmem_to_hbm [thread:$0]  (%p2681_p8), %s2575_s20, 256, %s2573_s26, %s1126_s18, %s2062_s30, %s2062_s30, %s2063_s12  }
 0x623 PF: > { %s1154_s29 = sand.u32 1, %s2029_s21   ;;  %p2682_p12 = scmp.ne.s32.totalorder %s2661_s1, 0 }
 0x624   : > { %p2683_p3 = scmp.ge.s32.totalorder %s2041_s24, 2  ;;  %s1155_s17 = scalar_lea.sflag [#allocation4], %s1154_s29 }
 0x626   : > { %p1511_p5 = pnand %p2683_p3, %p2682_p12 }
 0x628   : > { %2024 = dma.done.wait (!%p1511_p5), %s1155_s17, 256  }
 0x629   : > { %2026 = vsyncadd (!%p1511_p5), %s1155_s17, 4294967040  ;;  %p31_p9 = scmp.ge.s32.totalorder %s2408_s13, 4   ;;  %s2684_s21 = smov %s2033_s22 }
 0x62a   : > { %s2685_s22 = smov %s2037_s23  ;;  %s2686_s23 = smov %s2420_s3 }
 0x62b   : > { %s2687_s24 = smov %s2408_s13  ;;  %33 = sbr.rel (!%p31_p9) target bundleno = 16 (0x10), region = 157 }
 0x632   :  { %1160 = vsyncpa [#allocation3], 1 }
 0x633   :  { %1162 = vsyncpa [#allocation3 + $0x1], 1 }
 0x634   :  { %1163 = vsyncpa [#allocation6], 1 }
 0x635   :  { %1164 = vsyncpa [#allocation9], 1 }
 0x636   :  { %1165 = vsyncpa [#allocation12], 1 }
 0x637   :  { %1166 = vsyncpa [#allocation15], 1 }
 0x638   :  { %1167 = vsyncpa [#allocation18], 1 }
 0x639   :  { %1168 = vsyncpa [#allocation21], 1 }
 0x63a   :  { %1169 = vsyncpa [#allocation4], 1 }
 0x63b   :  { %1171 = vsyncpa [#allocation4 + $0x1], 1 }

</bundles_post_ra>
